<compile_context>
chip_gen: v6e
topology: v6e:2x2x1
jax: 0.10.0
libtpu: 0.0.40
codegen_flags: <defaults>
</compile_context>

<pallas_src>
import functools

import jax
import jax.numpy as jnp
from jax.experimental import pallas as pl
from jax.experimental.pallas import tpu as pltpu


def _round_up(x, m):
    return (x + m - 1) // m * m


def _mlp_kernel(x_ref,
                w1_ref, b1_ref,
                w2_ref, b2_ref,
                w3_ref, b3_ref,
                w4_ref, b4_ref,
                w5_ref, b5_ref,
                o_ref):
    """Entire 5-layer MLP forward for one batch tile, fully resident in VMEM."""
    compute_dtype = w1_ref.dtype      # bf16 (or f32) matmul operand dtype
    h = x_ref[...]                    # already in compute_dtype (cast in wrapper)

    # Hidden layers: MXU matmul with f32 accumulation, bias-add + ReLU in f32,
    # then cast back to the matmul operand dtype for the next layer.
    for w_ref, b_ref in ((w1_ref, b1_ref), (w2_ref, b2_ref),
                         (w3_ref, b3_ref), (w4_ref, b4_ref)):
        acc = jnp.dot(h, w_ref[...], preferred_element_type=jnp.float32)
        h = jnp.maximum(acc + b_ref[...], 0.0).astype(compute_dtype)

    # Output layer (no activation); lane-padded to a multiple of 128.
    y = jnp.dot(h, w5_ref[...], preferred_element_type=jnp.float32) + b5_ref[...]
    o_ref[...] = y.astype(o_ref.dtype)


@functools.partial(jax.jit, static_argnames=("block_batch", "use_bf16"))
def net_ann_5_no_bn_forward(x, params, *, block_batch=512, use_bf16=True):
    """x: (batch, n_in) float32.  params: dict of (in,out) weights and (1,out) biases.

    block_batch: target rows per grid step.  For large batches prefer 512-2048
    (multiple of 8; pick it so batch/block_batch is even on v7x for 2 TCs).
    """
    batch, n_in = x.shape
    neurons = params["w1"].shape[1]
    n_out = params["w5"].shape[1]

    compute_dtype = jnp.bfloat16 if use_bf16 else jnp.float32

    # ---- batch tiling: clamp tile to the (8-rounded) batch, zero-pad batch ----
    blk = _round_up(min(block_batch, _round_up(batch, 8)), 8)
    padded_batch = _round_up(batch, blk)
    if padded_batch != batch:
        x = jnp.pad(x, ((0, padded_batch - batch), (0, 0)))

    # ---- lane-dense output: pad n_out (and layer-5 params) to multiple of 128 ----
    n_out_p = _round_up(n_out, 128)
    w5, b5 = params["w5"], params["b5"]
    if n_out_p != n_out:
        w5 = jnp.pad(w5, ((0, 0), (0, n_out_p - n_out)))
        b5 = jnp.pad(b5, ((0, 0), (0, n_out_p - n_out)))

    # Cast matmul operands once (halves input/weight DMA bytes when bf16).
    # Biases stay f32: they are added to the f32 MXU accumulator.
    xc = x.astype(compute_dtype)
    operands = [
        params["w1"].astype(compute_dtype), params["b1"].astype(jnp.float32),
        params["w2"].astype(compute_dtype), params["b2"].astype(jnp.float32),
        params["w3"].astype(compute_dtype), params["b3"].astype(jnp.float32),
        params["w4"].astype(compute_dtype), params["b4"].astype(jnp.float32),
        w5.astype(compute_dtype),           b5.astype(jnp.float32),
    ]

    # Weights/biases are small: give each the full array as a single block with a
    # constant index map (resident across all grid steps, no re-DMA).
    def full(shape):
        return pl.BlockSpec(shape, lambda i: (0,) * len(shape))

    in_specs = [
        pl.BlockSpec((blk, n_in), lambda i: (i, 0)),                 # x tile
        full((n_in, neurons)),    full((1, neurons)),                # layer 1
        full((neurons, neurons)), full((1, neurons)),                # layer 2
        full((neurons, neurons)), full((1, neurons)),                # layer 3
        full((neurons, neurons)), full((1, neurons)),                # layer 4
        full((neurons, n_out_p)), full((1, n_out_p)),                # layer 5
    ]
    out_spec = pl.BlockSpec((blk, n_out_p), lambda i: (i, 0))

    grid = (padded_batch // blk,)

    # Advisory cost estimate for XLA's scheduler.
    flops = 2 * padded_batch * (n_in * neurons + 3 * neurons * neurons
                                + neurons * n_out_p)
    bytes_accessed = (xc.size * xc.dtype.itemsize
                      + sum(a.size * a.dtype.itemsize for a in operands)
                      + padded_batch * n_out_p * 4)

    out = pl.pallas_call(
        _mlp_kernel,
        out_shape=jax.ShapeDtypeStruct((padded_batch, n_out_p), jnp.float32),
        grid_spec=pltpu.PrefetchScalarGridSpec(
            num_scalar_prefetch=0,
            grid=grid,
            in_specs=in_specs,
            out_specs=out_spec,
        ),
        compiler_params=pltpu.CompilerParams(
            dimension_semantics=("parallel",)),
        cost_estimate=pl.CostEstimate(
            flops=flops, transcendentals=0, bytes_accessed=bytes_accessed),
    )(xc, *operands)

    # Strip batch padding and lane padding.
    return out[:batch, :n_out]


def init_params(key, n_in, n_out, neurons=128):
    """Deterministic init mimicking nn.Linear default (uniform +/- 1/sqrt(fan_in)).

    Weights stored as (in_features, out_features); biases as (1, out_features).
    """
    dims = [(n_in, neurons), (neurons, neurons), (neurons, neurons),
            (neurons, neurons), (neurons, n_out)]
    params = {}
    for idx, (fan_in, fan_out) in enumerate(dims, start=1):
        key, kw, kb = jax.random.split(key, 3)
        bound = 1.0 / (fan_in ** 0.5)
        params[f"w{idx}"] = jax.random.uniform(
            kw, (fan_in, fan_out), jnp.float32, -bound, bound)
        params[f"b{idx}"] = jax.random.uniform(
            kb, (1, fan_out), jnp.float32, -bound, bound)
    return params


def reference_forward_f32(x, params):
    """Pure-JAX f32 reference of the forward pass (dropout p=0 => identity)."""
    h = jnp.maximum(x @ params["w1"] + params["b1"], 0.0)
    h = jnp.maximum(h @ params["w2"] + params["b2"], 0.0)
    h = jnp.maximum(h @ params["w3"] + params["b3"], 0.0)
    h = jnp.maximum(h @ params["w4"] + params["b4"], 0.0)
    return h @ params["w5"] + params["b5"]


def reference_forward_mixed(x, params, compute_dtype=jnp.bfloat16):
    """Pure-JAX reference mirroring the kernel's precision (bf16 operands, f32 acc)."""
    h = x.astype(compute_dtype)
    for i in (1, 2, 3, 4):
        acc = jnp.dot(h, params[f"w{i}"].astype(compute_dtype),
                      preferred_element_type=jnp.float32)
        h = jnp.maximum(acc + params[f"b{i}"], 0.0).astype(compute_dtype)
    return jnp.dot(h, params["w5"].astype(compute_dtype),
                   preferred_element_type=jnp.float32) + params["b5"]


if __name__ == "__main__":
    n_in, n_out, neurons = 32, 16, 128
    batch = 200   # deliberately NOT a multiple of the tile -> exercises padding

    key = jax.random.PRNGKey(0)
    key, kx = jax.random.split(key)
    x = jax.random.normal(kx, (batch, n_in), jnp.float32)
    params = init_params(key, n_in, n_out, neurons)

    # block_batch=128 -> padded batch 256, grid of 2 parallel steps (even for v7x).
    out = net_ann_5_no_bn_forward(x, params, block_batch=128, use_bf16=True)
    out = jax.block_until_ready(out)
    assert out.shape == (batch, n_out)

    # Tight check against a reference with the same precision recipe as the kernel.
    ref_mixed = reference_forward_mixed(x, params)
    assert jnp.allclose(out, ref_mixed, atol=1e-3, rtol=1e-3), \
        "mismatch vs precision-matched JAX reference"

    # Loose sanity check against the pure-f32 reference (bf16 operands => ~1e-2 rel err).
    ref_f32 = reference_forward_f32(x, params)
    assert jnp.allclose(out, ref_f32, atol=1e-1, rtol=1e-1), \
        "mismatch vs f32 JAX reference"

    print("KERNEL_OK")
</pallas_src>

<mosaic_0001>
module attributes {stable_mosaic.version = 11 : i64} {
  func.func @_mlp_kernel(%arg0: i32, %arg1: memref<128x32xbf16, #tpu.memory_space<vmem>>, %arg2: memref<32x128xbf16, #tpu.memory_space<vmem>>, %arg3: memref<1x128xf32, #tpu.memory_space<vmem>>, %arg4: memref<128x128xbf16, #tpu.memory_space<vmem>>, %arg5: memref<1x128xf32, #tpu.memory_space<vmem>>, %arg6: memref<128x128xbf16, #tpu.memory_space<vmem>>, %arg7: memref<1x128xf32, #tpu.memory_space<vmem>>, %arg8: memref<128x128xbf16, #tpu.memory_space<vmem>>, %arg9: memref<1x128xf32, #tpu.memory_space<vmem>>, %arg10: memref<128x128xbf16, #tpu.memory_space<vmem>>, %arg11: memref<1x128xf32, #tpu.memory_space<vmem>>, %arg12: memref<128x128xf32, #tpu.memory_space<vmem>>) attributes {dimension_semantics = [#tpu.dimension_semantics<parallel>], iteration_bounds = array<i64: 2>, scalar_prefetch = 0 : i64, scratch_operands = 0 : i64, tpu.core_type = #tpu.core_type<tc>, window_params = [{transform_indices = @transform_0, window_bounds = array<i64: 128, 32>}, {pipeline_mode = #tpu.pipeline_mode<synchronous>, transform_indices = @transform_1, window_bounds = array<i64: 32, 128>}, {pipeline_mode = #tpu.pipeline_mode<synchronous>, transform_indices = @transform_2, window_bounds = array<i64: 1, 128>}, {pipeline_mode = #tpu.pipeline_mode<synchronous>, transform_indices = @transform_3, window_bounds = array<i64: 128, 128>}, {pipeline_mode = #tpu.pipeline_mode<synchronous>, transform_indices = @transform_4, window_bounds = array<i64: 1, 128>}, {pipeline_mode = #tpu.pipeline_mode<synchronous>, transform_indices = @transform_5, window_bounds = array<i64: 128, 128>}, {pipeline_mode = #tpu.pipeline_mode<synchronous>, transform_indices = @transform_6, window_bounds = array<i64: 1, 128>}, {pipeline_mode = #tpu.pipeline_mode<synchronous>, transform_indices = @transform_7, window_bounds = array<i64: 128, 128>}, {pipeline_mode = #tpu.pipeline_mode<synchronous>, transform_indices = @transform_8, window_bounds = array<i64: 1, 128>}, {pipeline_mode = #tpu.pipeline_mode<synchronous>, transform_indices = @transform_9, window_bounds = array<i64: 128, 128>}, {pipeline_mode = #tpu.pipeline_mode<synchronous>, transform_indices = @transform_10, window_bounds = array<i64: 1, 128>}, {transform_indices = @transform_11, window_bounds = array<i64: 128, 128>}]} {
    %c0 = arith.constant 0 : index
    %c0_0 = arith.constant 0 : index
    %0 = vector.load %arg1[%c0, %c0_0] : memref<128x32xbf16, #tpu.memory_space<vmem>>, vector<128x32xbf16>
    %c0_1 = arith.constant 0 : index
    %c0_2 = arith.constant 0 : index
    %1 = vector.load %arg2[%c0_1, %c0_2] : memref<32x128xbf16, #tpu.memory_space<vmem>>, vector<32x128xbf16>
    %cst = arith.constant dense<0.000000e+00> : vector<128x128xf32>
    %2 = tpu.matmul %0, %1, %cst {dimension_numbers = #tpu.dot_dimension_numbers<[1], [0], [0], [1], [0, 0, 1, 1], [], []>} : vector<128x32xbf16>, vector<32x128xbf16>, vector<128x128xf32> -> vector<128x128xf32>
    %c0_3 = arith.constant 0 : index
    %c0_4 = arith.constant 0 : index
    %3 = vector.load %arg3[%c0_3, %c0_4] : memref<1x128xf32, #tpu.memory_space<vmem>>, vector<1x128xf32>
    %4 = vector.broadcast %3 : vector<1x128xf32> to vector<128x128xf32>
    %5 = arith.addf %2, %4 : vector<128x128xf32>
    %cst_5 = arith.constant 0.000000e+00 : f32
    %6 = vector.broadcast %cst_5 : f32 to vector<128x128xf32>
    %7 = arith.maximumf %5, %6 : vector<128x128xf32>
    %8 = arith.truncf %7 : vector<128x128xf32> to vector<128x128xbf16>
    %c0_6 = arith.constant 0 : index
    %c0_7 = arith.constant 0 : index
    %9 = vector.load %arg4[%c0_6, %c0_7] : memref<128x128xbf16, #tpu.memory_space<vmem>>, vector<128x128xbf16>
    %cst_8 = arith.constant dense<0.000000e+00> : vector<128x128xf32>
    %10 = tpu.matmul %8, %9, %cst_8 {dimension_numbers = #tpu.dot_dimension_numbers<[1], [0], [0], [1], [0, 0, 1, 1], [], []>} : vector<128x128xbf16>, vector<128x128xbf16>, vector<128x128xf32> -> vector<128x128xf32>
    %c0_9 = arith.constant 0 : index
    %c0_10 = arith.constant 0 : index
    %11 = vector.load %arg5[%c0_9, %c0_10] : memref<1x128xf32, #tpu.memory_space<vmem>>, vector<1x128xf32>
    %12 = vector.broadcast %11 : vector<1x128xf32> to vector<128x128xf32>
    %13 = arith.addf %10, %12 : vector<128x128xf32>
    %cst_11 = arith.constant 0.000000e+00 : f32
    %14 = vector.broadcast %cst_11 : f32 to vector<128x128xf32>
    %15 = arith.maximumf %13, %14 : vector<128x128xf32>
    %16 = arith.truncf %15 : vector<128x128xf32> to vector<128x128xbf16>
    %c0_12 = arith.constant 0 : index
    %c0_13 = arith.constant 0 : index
    %17 = vector.load %arg6[%c0_12, %c0_13] : memref<128x128xbf16, #tpu.memory_space<vmem>>, vector<128x128xbf16>
    %cst_14 = arith.constant dense<0.000000e+00> : vector<128x128xf32>
    %18 = tpu.matmul %16, %17, %cst_14 {dimension_numbers = #tpu.dot_dimension_numbers<[1], [0], [0], [1], [0, 0, 1, 1], [], []>} : vector<128x128xbf16>, vector<128x128xbf16>, vector<128x128xf32> -> vector<128x128xf32>
    %c0_15 = arith.constant 0 : index
    %c0_16 = arith.constant 0 : index
    %19 = vector.load %arg7[%c0_15, %c0_16] : memref<1x128xf32, #tpu.memory_space<vmem>>, vector<1x128xf32>
    %20 = vector.broadcast %19 : vector<1x128xf32> to vector<128x128xf32>
    %21 = arith.addf %18, %20 : vector<128x128xf32>
    %cst_17 = arith.constant 0.000000e+00 : f32
    %22 = vector.broadcast %cst_17 : f32 to vector<128x128xf32>
    %23 = arith.maximumf %21, %22 : vector<128x128xf32>
    %24 = arith.truncf %23 : vector<128x128xf32> to vector<128x128xbf16>
    %c0_18 = arith.constant 0 : index
    %c0_19 = arith.constant 0 : index
    %25 = vector.load %arg8[%c0_18, %c0_19] : memref<128x128xbf16, #tpu.memory_space<vmem>>, vector<128x128xbf16>
    %cst_20 = arith.constant dense<0.000000e+00> : vector<128x128xf32>
    %26 = tpu.matmul %24, %25, %cst_20 {dimension_numbers = #tpu.dot_dimension_numbers<[1], [0], [0], [1], [0, 0, 1, 1], [], []>} : vector<128x128xbf16>, vector<128x128xbf16>, vector<128x128xf32> -> vector<128x128xf32>
    %c0_21 = arith.constant 0 : index
    %c0_22 = arith.constant 0 : index
    %27 = vector.load %arg9[%c0_21, %c0_22] : memref<1x128xf32, #tpu.memory_space<vmem>>, vector<1x128xf32>
    %28 = vector.broadcast %27 : vector<1x128xf32> to vector<128x128xf32>
    %29 = arith.addf %26, %28 : vector<128x128xf32>
    %cst_23 = arith.constant 0.000000e+00 : f32
    %30 = vector.broadcast %cst_23 : f32 to vector<128x128xf32>
    %31 = arith.maximumf %29, %30 : vector<128x128xf32>
    %32 = arith.truncf %31 : vector<128x128xf32> to vector<128x128xbf16>
    %c0_24 = arith.constant 0 : index
    %c0_25 = arith.constant 0 : index
    %33 = vector.load %arg10[%c0_24, %c0_25] : memref<128x128xbf16, #tpu.memory_space<vmem>>, vector<128x128xbf16>
    %cst_26 = arith.constant dense<0.000000e+00> : vector<128x128xf32>
    %34 = tpu.matmul %32, %33, %cst_26 {dimension_numbers = #tpu.dot_dimension_numbers<[1], [0], [0], [1], [0, 0, 1, 1], [], []>} : vector<128x128xbf16>, vector<128x128xbf16>, vector<128x128xf32> -> vector<128x128xf32>
    %c0_27 = arith.constant 0 : index
    %c0_28 = arith.constant 0 : index
    %35 = vector.load %arg11[%c0_27, %c0_28] : memref<1x128xf32, #tpu.memory_space<vmem>>, vector<1x128xf32>
    %36 = vector.broadcast %35 : vector<1x128xf32> to vector<128x128xf32>
    %37 = arith.addf %34, %36 : vector<128x128xf32>
    %c0_29 = arith.constant 0 : index
    %c0_30 = arith.constant 0 : index
    %38 = vector.load %arg12[%c0_29, %c0_30] : memref<128x128xf32, #tpu.memory_space<vmem>>, vector<128x128xf32>
    tpu.vector_store %arg12[%c0_29, %c0_30], %37 {strides = array<i32>} : memref<128x128xf32, #tpu.memory_space<vmem>>, vector<128x128xf32>,
    return
  }
  func.func @transform_0(%arg0: i32) -> (i32, i32) {
    %c0_i32 = arith.constant 0 : i32
    %c0_i32_0 = arith.constant 0 : i32
    return %arg0, %c0_i32 : i32, i32
  }
  func.func @transform_1(%arg0: i32) -> (i32, i32) {
    %c0_i32 = arith.constant 0 : i32
    %c0_i32_0 = arith.constant 0 : i32
    %c0_i32_1 = arith.constant 0 : i32
    return %c0_i32, %c0_i32_0 : i32, i32
  }
  func.func @transform_2(%arg0: i32) -> (i32, i32) {
    %c0_i32 = arith.constant 0 : i32
    %c0_i32_0 = arith.constant 0 : i32
    %c0_i32_1 = arith.constant 0 : i32
    return %c0_i32, %c0_i32_0 : i32, i32
  }
  func.func @transform_3(%arg0: i32) -> (i32, i32) {
    %c0_i32 = arith.constant 0 : i32
    %c0_i32_0 = arith.constant 0 : i32
    %c0_i32_1 = arith.constant 0 : i32
    return %c0_i32, %c0_i32_0 : i32, i32
  }
  func.func @transform_4(%arg0: i32) -> (i32, i32) {
    %c0_i32 = arith.constant 0 : i32
    %c0_i32_0 = arith.constant 0 : i32
    %c0_i32_1 = arith.constant 0 : i32
    return %c0_i32, %c0_i32_0 : i32, i32
  }
  func.func @transform_5(%arg0: i32) -> (i32, i32) {
    %c0_i32 = arith.constant 0 : i32
    %c0_i32_0 = arith.constant 0 : i32
    %c0_i32_1 = arith.constant 0 : i32
    return %c0_i32, %c0_i32_0 : i32, i32
  }
  func.func @transform_6(%arg0: i32) -> (i32, i32) {
    %c0_i32 = arith.constant 0 : i32
    %c0_i32_0 = arith.constant 0 : i32
    %c0_i32_1 = arith.constant 0 : i32
    return %c0_i32, %c0_i32_0 : i32, i32
  }
  func.func @transform_7(%arg0: i32) -> (i32, i32) {
    %c0_i32 = arith.constant 0 : i32
    %c0_i32_0 = arith.constant 0 : i32
    %c0_i32_1 = arith.constant 0 : i32
    return %c0_i32, %c0_i32_0 : i32, i32
  }
  func.func @transform_8(%arg0: i32) -> (i32, i32) {
    %c0_i32 = arith.constant 0 : i32
    %c0_i32_0 = arith.constant 0 : i32
    %c0_i32_1 = arith.constant 0 : i32
    return %c0_i32, %c0_i32_0 : i32, i32
  }
  func.func @transform_9(%arg0: i32) -> (i32, i32) {
    %c0_i32 = arith.constant 0 : i32
    %c0_i32_0 = arith.constant 0 : i32
    %c0_i32_1 = arith.constant 0 : i32
    return %c0_i32, %c0_i32_0 : i32, i32
  }
  func.func @transform_10(%arg0: i32) -> (i32, i32) {
    %c0_i32 = arith.constant 0 : i32
    %c0_i32_0 = arith.constant 0 : i32
    %c0_i32_1 = arith.constant 0 : i32
    return %c0_i32, %c0_i32_0 : i32, i32
  }
  func.func @transform_11(%arg0: i32) -> (i32, i32) {
    %c0_i32 = arith.constant 0 : i32
    %c0_i32_0 = arith.constant 0 : i32
    return %arg0, %c0_i32 : i32, i32
  }
}

</mosaic_0001>

<bundles_post_ra>
// kernel: net_ann_5_no_bn_forward.1
= control target key start
LH: loop header
LB: loop body
LE: loop exit
PB: predicated region body
PF: predicated region fallthrough
CT: control target
= control target key end

     0   :  { %s1838_s17 = smov 0   ;;  %s2002_s0 = inlined_call_operand.vmem [shape: bf16[256,32], index: 0, kind: input, shape index: {}]   ;;  %s2003_s1 = inlined_call_operand.vmem [shape: bf16[32,128], index: 1, kind: input, shape index: {}]   ;;  %s2004_s2 = inlined_call_operand.vmem [shape: f32[1,128], index: 2, kind: input, shape index: {}]   ;;  %s2005_s3 = inlined_call_operand.vmem [shape: bf16[128,128], index: 3, kind: input, shape index: {}]   ;;  %s2006_s4 = inlined_call_operand.vmem [shape: f32[1,128], index: 4, kind: input, shape index: {}]   ;;  %s2007_s5 = inlined_call_operand.vmem [shape: bf16[128,128], index: 5, kind: input, shape index: {}]   ;;  %s2008_s6 = inlined_call_operand.vmem [shape: f32[1,128], index: 6, kind: input, shape index: {}]   ;;  %s2009_s7 = inlined_call_operand.vmem [shape: bf16[128,128], index: 7, kind: input, shape index: {}]   ;;  %s2010_s8 = inlined_call_operand.vmem [shape: f32[1,128], index: 8, kind: input, shape index: {}]   ;;  %s2011_s9 = inlined_call_operand.vmem [shape: bf16[128,128], index: 9, kind: input, shape index: {}]   ;;  %s2012_s10 = inlined_call_operand.vmem [shape: f32[1,128], index: 10, kind: input, shape index: {}]   ;;  %s2013_s11 = inlined_call_operand.vmem [shape: f32[256,128], index: 11, kind: output, shape index: {}]  }
   0x1 LB: > { %s1432_s18 = sadd.s32 4294967295, %s1776_s17   ;;  %p1436_p0 = scmp.ge.s32.totalorder %s1776_s17, 1  ;;  %s1776_s17 = sphi %s1838_s17, %s21_s17  }
   0x2   : > { %p338_p1 = scmp.lt.s32.totalorder %s1776_s17, 3 }
   0x4   : > { %p339_p2 = pnand %p1436_p0, %p338_p1 }
   0x5   : > { %s1437_s21 = sshll.u32 (!%p339_p2), %s1432_s18, 4 }
   0x6   : > { %342 = sbr.rel (%p339_p2) target bundleno = 1070 (0x42e), region = 64  ;;  %p379_p3 = scmp.lt.s32.totalorder (!%p339_p2), %s1437_s21, 31 }
   0xb   : > { %v1728_v0 = vld [vmem:[%s2003_s1 + $0x8] sm:$0xff]   ;;  %v1729_v1 = vld [vmem:[%s2003_s1] sm:$0xff]   ;;  %v1738_v2 = vld [vmem:[%s2005_s3 + $0x38] sm:$0xff]   ;;  %s2015_s21 = smov (!%p379_p3, %s1437_s21), 31  ;;  %vm470_vm0 = vcmask 261120  }
   0xc   : > { %1572 = vmatprep.subr.bf16.mxu0 %v1728_v0  ;;  %v1739_v3 = vld [vmem:[%s2005_s3 + $0x30] sm:$0xff]   ;;  %1592 = vmatprep.subr.bf16.mxu1 %v1738_v2  ;;  %s1438_s28 = sshll.u32 %s2015_s21, 2  ;;  %v1740_v4 = vld [vmem:[%s2005_s3 + $0x28] sm:$0xff]   ;;  %v1741_v8 = vld [vmem:[%s2005_s3 + $0x20] sm:$0xff]   ;;  %s1440_s13 = sshll.u32 %s2015_s21, 3 }
   0xd   : > { %1573 = vmatpush3.bf16.msra.mxu0 %v1728_v0  ;;  %1593 = vmatpush3.bf16.msra.mxu1 %v1738_v2  ;;  %s382_s12 = scalar_lea.vmem %s2002_s0, %s1438_s28  ;;  %v1742_v9 = vld [vmem:[%s2005_s3 + $0x18] sm:$0xff]   ;;  %v1743_v15 = vld [vmem:[%s2005_s3 + $0x10] sm:$0xff]   ;;  %v1744_v16 = vld [vmem:[%s2005_s3 + $0x8] sm:$0xff]   ;;  %s1981_s19 = scalar_lea.vmem %s2013_s11, %s1440_s13 }
   0xe   : > { %1574 = vmatprep.subr.bf16.mxu0 %v1729_v1  ;;  %1594 = vmatprep.subr.bf16.mxu1 %v1739_v3  ;;  %v1730_v5 = vld [vmem:[%s382_s12] sm:$0xff]   ;;  %v1731_v6 = vld [vmem:[%s382_s12 + $0x8] sm:$0xff]   ;;  %v1732_v7 = vld [vmem:[%s382_s12 + $0x10] sm:$0xff]  }
   0xf   : > { %1576 = vmatprep.mubr.msk.bf16.mxu0 %vm470_vm0, %v1730_v5  ;;  %v1733_v10 = vld [vmem:[%s382_s12 + $0x18] sm:$0xff]   ;;  %v1734_v11 = vld [vmem:[%s382_s12 + $0x20] sm:$0xff]   ;;  %v1735_v12 = vld [vmem:[%s382_s12 + $0x28] sm:$0xff]  }
  0x10   : > { %v1736_v13 = vld [vmem:[%s382_s12 + $0x30] sm:$0xff]   ;;  %v1737_v14 = vld [vmem:[%s382_s12 + $0x38] sm:$0xff]   ;;  %v1745_v17 = vld [vmem:[%s2005_s3] sm:$0xff]  }
  0x11   : > { %1575 = vmatpush3.bf16.msra.mxu0 %v1729_v1  ;;  %1595 = vmatpush3.bf16.msra.mxu1 %v1739_v3  ;;  %v1746_v18 = vld [vmem:[%s2007_s5 + $0x38] sm:$0xff]   ;;  %v1747_v19 = vld [vmem:[%s2007_s5 + $0x30] sm:$0xff]   ;;  %v1748_v20 = vld [vmem:[%s2007_s5 + $0x28] sm:$0xff]  }
  0x12   : > { %1596 = vmatprep.subr.bf16.mxu1 %v1740_v4  ;;  %1624 = vmatprep.subr.bf16.mxu0 %v1746_v18  ;;  %v1749_v21 = vld [vmem:[%s2007_s5 + $0x20] sm:$0xff]   ;;  %v1750_v22 = vld [vmem:[%s2007_s5 + $0x18] sm:$0xff]  }
  0x13   : > { %v1441_v25 = vld [vmem:[%s2004_s2] ss:$0 sm:$0xff] }
  0x14   : > { %1577 = vmatmul.mubr.msk.bf16.vlgmr.msra.gmra.mxu0 %vm470_vm0, %v1731_v6 }
  0x15   : > { %1580 = vmatprep.mubr.msk.bf16.mxu0 %vm470_vm0, %v1732_v7  ;;  %1597 = vmatpush3.bf16.msra.mxu1 %v1740_v4 }
  0x16   : > { %1598 = vmatprep.subr.bf16.mxu1 %v1741_v8  ;;  %1625 = vmatpush3.bf16.msra.mxu0 %v1746_v18  ;;  %v1753_v18 = vld [vmem:[%s2007_s5] sm:$0xff]  }
  0x17   : > { %1626 = vmatprep.subr.bf16.mxu0 %v1747_v19 }
  0x19   : > { %1599 = vmatpush3.bf16.msra.mxu1 %v1741_v8 }
  0x1a   : > { %1600 = vmatprep.subr.bf16.mxu1 %v1742_v9  ;;  %1627 = vmatpush3.bf16.msra.mxu0 %v1747_v19  ;;  %v1754_v19 = vld [vmem:[%s2009_s7 + $0x38] sm:$0xff]  }
  0x1b   : > { %1628 = vmatprep.subr.bf16.mxu0 %v1748_v20 }
  0x1c   : > { %1581 = vmatmul.mubr.msk.bf16.gmra.mxu0 %vm470_vm0, %v1733_v10 }
  0x1d   : > { %1584 = vmatprep.mubr.msk.bf16.mxu0 %vm470_vm0, %v1734_v11  ;;  %1601 = vmatpush3.bf16.msra.mxu1 %v1742_v9 }
  0x1e   : > { %1602 = vmatprep.subr.bf16.mxu1 %v1743_v15  ;;  %1629 = vmatpush3.bf16.msra.mxu0 %v1748_v20  ;;  %v1755_v20 = vld [vmem:[%s2009_s7 + $0x30] sm:$0xff]  }
  0x1f   : > { %1630 = vmatprep.subr.bf16.mxu0 %v1749_v21 }
  0x21   : > { %1603 = vmatpush3.bf16.msra.mxu1 %v1743_v15 }
  0x22   : > { %1604 = vmatprep.subr.bf16.mxu1 %v1744_v16  ;;  %1631 = vmatpush3.bf16.msra.mxu0 %v1749_v21  ;;  %v1756_v21 = vld [vmem:[%s2009_s7 + $0x28] sm:$0xff]  }
  0x23   : > { %1632 = vmatprep.subr.bf16.mxu0 %v1750_v22 }
  0x24   : > { %1585 = vmatmul.mubr.msk.bf16.gmra.mxu0 %vm470_vm0, %v1735_v12 }
  0x25   : > { %1588 = vmatprep.mubr.msk.bf16.mxu0 %vm470_vm0, %v1736_v13  ;;  %1605 = vmatpush3.bf16.msra.mxu1 %v1744_v16  ;;  %v1751_v16 = vld [vmem:[%s2007_s5 + $0x10] sm:$0xff]  }
  0x26   : > { %1606 = vmatprep.subr.bf16.mxu1 %v1745_v17  ;;  %1633 = vmatpush3.bf16.msra.mxu0 %v1750_v22  ;;  %v1757_v22 = vld [vmem:[%s2009_s7 + $0x20] sm:$0xff]  }
  0x27   : > { %1634 = vmatprep.subr.bf16.mxu0 %v1751_v16 }
  0x29   : > { %1607 = vmatpush3.bf16.msra.mxu1 %v1745_v17  ;;  %v1752_v17 = vld [vmem:[%s2007_s5 + $0x8] sm:$0xff]  }
  0x2a   : > { %1635 = vmatpush3.bf16.msra.mxu0 %v1751_v16  ;;  %1656 = vmatprep.subr.bf16.mxu1 %v1754_v19 }
  0x2b   : > { %1636 = vmatprep.subr.bf16.mxu0 %v1752_v17 }
  0x2c   : > { %1589 = vmatmul.mubr.msk.bf16.gmra.mxu0 %vm470_vm0, %v1737_v14 }
  0x2e   : > { %1637 = vmatpush3.bf16.msra.mxu0 %v1752_v17  ;;  %v1759_v17 = vld [vmem:[%s2009_s7 + $0x10] sm:$0xff]  }
  0x2f   : > { %1638 = vmatprep.subr.bf16.mxu0 %v1753_v18 }
  0x32   : > { %1639 = vmatpush3.bf16.msra.mxu0 %v1753_v18  ;;  %v1760_v18 = vld [vmem:[%s2009_s7 + $0x8] sm:$0xff]  }
  0xd4   : > { %v1578_v23 = vpop.f32.mrf.mxu0 }
  0xd5   : > { %v538_v29 = vadd.f32 %v1578_v23, %v1441_v25  ;;  %v1758_v23 = vld [vmem:[%s2009_s7 + $0x18] sm:$0xff]  }
  0xd6   : > { %v529_v24 = vpop.f32.mrf.mxu0 }
  0xd7   : > { %v530_v27 = vadd.f32 %v1441_v25, %v529_v24  ;;  %v594_v36 = vmax.f32 %v538_v29, 0.0 }
  0xd8   : > { %v1579_v26 = vpop.f32.mrf.mxu0 }
  0xd9   : > { %v541_v28 = vadd.f32 %v1579_v26, %v1441_v25  ;;  %v592_v34 = vmax.f32 %v530_v27, 0.0  ;;  %v1460_v26 = vld [vmem:[%s2006_s4] ss:$0 sm:$0xff] }
  0xda   : > { %v532_v30 = vpop.f32.mrf.mxu0 }
  0xdb   : > { %v533_v31 = vadd.f32 %v1441_v25, %v532_v30  ;;  %v595_v32 = vmax.f32 %v541_v28, 0.0 }
  0xdc   : > { %v1582_v33 = vpop.f32.mrf.mxu0 }
  0xdd   : > { %v593_v35 = vmax.f32 %v533_v31, 0.0  ;;  %v609_v39 = vpack.c.bf16 %v595_v32, %v594_v36  ;;  %v554_v43 = vadd.f32 %v1582_v33, %v1441_v25 }
  0xde   : > { %v545_v37 = vpop.f32.mrf.mxu0 }
  0xdf   : > { %v608_v38 = vpack.c.bf16 %v593_v35, %v592_v34  ;;  %v546_v41 = vadd.f32 %v1441_v25, %v545_v37  ;;  %v598_v50 = vmax.f32 %v554_v43, 0.0 }
  0xe0   : > { %v1583_v40 = vpop.f32.mrf.mxu0 }
  0xe1   : > { %v557_v42 = vadd.f32 %v1583_v40, %v1441_v25  ;;  %1608 = vmatprep.mubr.bf16.mxu1 %v608_v38  ;;  %v596_v48 = vmax.f32 %v546_v41, 0.0 }
  0xe2   : > { %v548_v44 = vpop.f32.mrf.mxu0  ;;  %1609 = vmatmul.mubr.bf16.vlgmr.msra.gmra.mxu1 %v609_v39 }
  0xe3   : > { %v549_v45 = vadd.f32 %v1441_v25, %v548_v44  ;;  %v599_v46 = vmax.f32 %v557_v42, 0.0  ;;  %1657 = vmatpush3.bf16.msra.mxu1 %v1754_v19  ;;  %v1761_v19 = vld [vmem:[%s2009_s7] sm:$0xff]  }
  0xe4   : > { %v1586_v47 = vpop.f32.mrf.mxu0  ;;  %1658 = vmatprep.subr.bf16.mxu1 %v1755_v20 }
  0xe5   : > { %v597_v49 = vmax.f32 %v549_v45, 0.0  ;;  %v611_v53 = vpack.c.bf16 %v599_v46, %v598_v50  ;;  %v570_v57 = vadd.f32 %v1586_v47, %v1441_v25 }
  0xe6   : > { %v561_v51 = vpop.f32.mrf.mxu0 }
  0xe7   : > { %v610_v52 = vpack.c.bf16 %v597_v49, %v596_v48  ;;  %v562_v55 = vadd.f32 %v1441_v25, %v561_v51  ;;  %v602_v0 = vmax.f32 %v570_v57, 0.0  ;;  %1659 = vmatpush3.bf16.msra.mxu1 %v1755_v20  ;;  %v1762_v20 = vld [vmem:[%s2011_s9 + $0x38] sm:$0xff]  }
  0xe8   : > { %v1587_v54 = vpop.f32.mrf.mxu0  ;;  %1660 = vmatprep.subr.bf16.mxu1 %v1756_v21  ;;  %1688 = vmatprep.subr.bf16.mxu0 %v1762_v20 }
  0xe9   : > { %v573_v56 = vadd.f32 %v1587_v54, %v1441_v25  ;;  %1612 = vmatprep.mubr.bf16.mxu1 %v610_v52  ;;  %v600_v62 = vmax.f32 %v562_v55, 0.0 }
  0xea   : > { %v564_v58 = vpop.f32.mrf.mxu0  ;;  %1613 = vmatmul.mubr.bf16.gmra.mxu1 %v611_v53 }
  0xeb   : > { %v565_v59 = vadd.f32 %v1441_v25, %v564_v58  ;;  %v603_v60 = vmax.f32 %v573_v56, 0.0  ;;  %1661 = vmatpush3.bf16.msra.mxu1 %v1756_v21  ;;  %v1763_v21 = vld [vmem:[%s2011_s9 + $0x30] sm:$0xff]  }
  0xec   : > { %v1590_v61 = vpop.f32.mrf.mxu0  ;;  %1662 = vmatprep.subr.bf16.mxu1 %v1757_v22 }
  0xed   : > { %v601_v63 = vmax.f32 %v565_v59, 0.0  ;;  %v613_v3 = vpack.c.bf16 %v603_v60, %v602_v0  ;;  %v586_v7 = vadd.f32 %v1590_v61, %v1441_v25 }
  0xee   : > { %v577_v1 = vpop.f32.mrf.mxu0 }
  0xef   : > { %v612_v2 = vpack.c.bf16 %v601_v63, %v600_v62  ;;  %v578_v5 = vadd.f32 %v1441_v25, %v577_v1  ;;  %v606_v13 = vmax.f32 %v586_v7, 0.0  ;;  %1663 = vmatpush3.bf16.msra.mxu1 %v1757_v22  ;;  %v1764_v22 = vld [vmem:[%s2011_s9 + $0x28] sm:$0xff]  }
  0xf0   : > { %v1591_v4 = vpop.f32.mrf.mxu0  ;;  %1664 = vmatprep.subr.bf16.mxu1 %v1758_v23 }
  0xf1   : > { %v589_v6 = vadd.f32 %v1591_v4, %v1441_v25  ;;  %1616 = vmatprep.mubr.bf16.mxu1 %v612_v2  ;;  %v604_v11 = vmax.f32 %v578_v5, 0.0 }
  0xf2   : > { %v580_v8 = vpop.f32.mrf.mxu0  ;;  %1617 = vmatmul.mubr.bf16.gmra.mxu1 %v613_v3 }
  0xf3   : > { %v581_v9 = vadd.f32 %v1441_v25, %v580_v8  ;;  %v607_v10 = vmax.f32 %v589_v6, 0.0  ;;  %1665 = vmatpush3.bf16.msra.mxu1 %v1758_v23  ;;  %v1765_v23 = vld [vmem:[%s2011_s9 + $0x20] sm:$0xff]  }
  0xf4   : > { %1666 = vmatprep.subr.bf16.mxu1 %v1759_v17 }
  0xf5   : > { %v605_v12 = vmax.f32 %v581_v9, 0.0  ;;  %v615_v15 = vpack.c.bf16 %v607_v10, %v606_v13 }
  0xf7   : > { %v614_v14 = vpack.c.bf16 %v605_v12, %v604_v11  ;;  %1667 = vmatpush3.bf16.msra.mxu1 %v1759_v17 }
  0xf8   : > { %1668 = vmatprep.subr.bf16.mxu1 %v1760_v18 }
  0xf9   : > { %1620 = vmatprep.mubr.bf16.mxu1 %v614_v14 }
  0xfa   : > { %1621 = vmatmul.mubr.bf16.gmra.mxu1 %v615_v15 }
  0xfb   : > { %1669 = vmatpush3.bf16.msra.mxu1 %v1760_v18  ;;  %v1767_v18 = vld [vmem:[%s2011_s9 + $0x10] sm:$0xff]  }
  0xfc   : > { %1670 = vmatprep.subr.bf16.mxu1 %v1761_v19 }
  0xff   : > { %1671 = vmatpush3.bf16.msra.mxu1 %v1761_v19  ;;  %v1768_v19 = vld [vmem:[%s2011_s9 + $0x8] sm:$0xff]  }
 0x1a2   : > { %v1610_v24 = vpop.f32.mrf.mxu1 }
 0x1a3   : > { %v730_v30 = vadd.f32 %v1610_v24, %v1460_v26  ;;  %v1766_v24 = vld [vmem:[%s2011_s9 + $0x18] sm:$0xff]  }
 0x1a4   : > { %v721_v25 = vpop.f32.mrf.mxu1 }
 0x1a5   : > { %v722_v28 = vadd.f32 %v1460_v26, %v721_v25  ;;  %v786_v37 = vmax.f32 %v730_v30, 0.0 }
 0x1a6   : > { %v1611_v27 = vpop.f32.mrf.mxu1 }
 0x1a7   : > { %v733_v29 = vadd.f32 %v1611_v27, %v1460_v26  ;;  %v784_v35 = vmax.f32 %v722_v28, 0.0  ;;  %v1469_v27 = vld [vmem:[%s2008_s6] ss:$0 sm:$0xff] }
 0x1a8   : > { %v724_v31 = vpop.f32.mrf.mxu1 }
 0x1a9   : > { %v725_v32 = vadd.f32 %v1460_v26, %v724_v31  ;;  %v787_v33 = vmax.f32 %v733_v29, 0.0 }
 0x1aa   : > { %v1614_v34 = vpop.f32.mrf.mxu1 }
 0x1ab   : > { %v785_v36 = vmax.f32 %v725_v32, 0.0  ;;  %v801_v40 = vpack.c.bf16 %v787_v33, %v786_v37  ;;  %v746_v44 = vadd.f32 %v1614_v34, %v1460_v26 }
 0x1ac   : > { %v737_v38 = vpop.f32.mrf.mxu1 }
 0x1ad   : > { %v800_v39 = vpack.c.bf16 %v785_v36, %v784_v35  ;;  %v738_v42 = vadd.f32 %v1460_v26, %v737_v38  ;;  %v790_v51 = vmax.f32 %v746_v44, 0.0 }
 0x1ae   : > { %v1615_v41 = vpop.f32.mrf.mxu1 }
 0x1af   : > { %v749_v43 = vadd.f32 %v1615_v41, %v1460_v26  ;;  %1640 = vmatprep.mubr.bf16.mxu0 %v800_v39  ;;  %v788_v49 = vmax.f32 %v738_v42, 0.0 }
 0x1b0   : > { %v740_v45 = vpop.f32.mrf.mxu1  ;;  %1641 = vmatmul.mubr.bf16.vlgmr.msra.gmra.mxu0 %v801_v40 }
 0x1b1   : > { %v741_v46 = vadd.f32 %v1460_v26, %v740_v45  ;;  %v791_v47 = vmax.f32 %v749_v43, 0.0  ;;  %1689 = vmatpush3.bf16.msra.mxu0 %v1762_v20  ;;  %v1769_v20 = vld [vmem:[%s2011_s9] sm:$0xff]  }
 0x1b2   : > { %v1618_v48 = vpop.f32.mrf.mxu1  ;;  %1690 = vmatprep.subr.bf16.mxu0 %v1763_v21 }
 0x1b3   : > { %v789_v50 = vmax.f32 %v741_v46, 0.0  ;;  %v803_v54 = vpack.c.bf16 %v791_v47, %v790_v51  ;;  %v762_v58 = vadd.f32 %v1618_v48, %v1460_v26 }
 0x1b4   : > { %v753_v52 = vpop.f32.mrf.mxu1 }
 0x1b5   : > { %v802_v53 = vpack.c.bf16 %v789_v50, %v788_v49  ;;  %v754_v56 = vadd.f32 %v1460_v26, %v753_v52  ;;  %v794_v1 = vmax.f32 %v762_v58, 0.0  ;;  %1691 = vmatpush3.bf16.msra.mxu0 %v1763_v21 }
 0x1b6   : > { %v1619_v55 = vpop.f32.mrf.mxu1  ;;  %1692 = vmatprep.subr.bf16.mxu0 %v1764_v22 }
 0x1b7   : > { %v765_v57 = vadd.f32 %v1619_v55, %v1460_v26  ;;  %1644 = vmatprep.mubr.bf16.mxu0 %v802_v53  ;;  %v792_v63 = vmax.f32 %v754_v56, 0.0 }
 0x1b8   : > { %v756_v59 = vpop.f32.mrf.mxu1  ;;  %1645 = vmatmul.mubr.bf16.gmra.mxu0 %v803_v54 }
 0x1b9   : > { %v757_v60 = vadd.f32 %v1460_v26, %v756_v59  ;;  %v795_v61 = vmax.f32 %v765_v57, 0.0  ;;  %1693 = vmatpush3.bf16.msra.mxu0 %v1764_v22 }
 0x1ba   : > { %v1622_v62 = vpop.f32.mrf.mxu1  ;;  %1694 = vmatprep.subr.bf16.mxu0 %v1765_v23 }
 0x1bb   : > { %v793_v0 = vmax.f32 %v757_v60, 0.0  ;;  %v805_v4 = vpack.c.bf16 %v795_v61, %v794_v1  ;;  %v778_v8 = vadd.f32 %v1622_v62, %v1460_v26 }
 0x1bc   : > { %v769_v2 = vpop.f32.mrf.mxu1 }
 0x1bd   : > { %v804_v3 = vpack.c.bf16 %v793_v0, %v792_v63  ;;  %v770_v6 = vadd.f32 %v1460_v26, %v769_v2  ;;  %v798_v14 = vmax.f32 %v778_v8, 0.0  ;;  %1695 = vmatpush3.bf16.msra.mxu0 %v1765_v23  ;;  %v1478_v23 = vld [vmem:[%s2010_s8] ss:$0 sm:$0xff] }
 0x1be   : > { %v1623_v5 = vpop.f32.mrf.mxu1  ;;  %1696 = vmatprep.subr.bf16.mxu0 %v1766_v24 }
 0x1bf   : > { %v781_v7 = vadd.f32 %v1623_v5, %v1460_v26  ;;  %1648 = vmatprep.mubr.bf16.mxu0 %v804_v3  ;;  %v796_v12 = vmax.f32 %v770_v6, 0.0 }
 0x1c0   : > { %v772_v9 = vpop.f32.mrf.mxu1  ;;  %1649 = vmatmul.mubr.bf16.gmra.mxu0 %v805_v4 }
 0x1c1   : > { %v773_v10 = vadd.f32 %v1460_v26, %v772_v9  ;;  %v799_v11 = vmax.f32 %v781_v7, 0.0  ;;  %1697 = vmatpush3.bf16.msra.mxu0 %v1766_v24 }
 0x1c2   : > { %1698 = vmatprep.subr.bf16.mxu0 %v1767_v18 }
 0x1c3   : > { %v797_v13 = vmax.f32 %v773_v10, 0.0  ;;  %v807_v16 = vpack.c.bf16 %v799_v11, %v798_v14 }
 0x1c5   : > { %v806_v15 = vpack.c.bf16 %v797_v13, %v796_v12  ;;  %1699 = vmatpush3.bf16.msra.mxu0 %v1767_v18 }
 0x1c6   : > { %1700 = vmatprep.subr.bf16.mxu0 %v1768_v19 }
 0x1c7   : > { %1652 = vmatprep.mubr.bf16.mxu0 %v806_v15 }
 0x1c8   : > { %1653 = vmatmul.mubr.bf16.gmra.mxu0 %v807_v16 }
 0x1c9   : > { %1701 = vmatpush3.bf16.msra.mxu0 %v1768_v19 }
 0x1ca   : > { %1702 = vmatprep.subr.bf16.mxu0 %v1769_v20 }
 0x1cd   : > { %1703 = vmatpush3.bf16.msra.mxu0 %v1769_v20 }
 0x270   : > { %v1642_v25 = vpop.f32.mrf.mxu0 }
 0x271   : > { %v922_v31 = vadd.f32 %v1642_v25, %v1469_v27 }
 0x272   : > { %v913_v26 = vpop.f32.mrf.mxu0 }
 0x273   : > { %v914_v29 = vadd.f32 %v1469_v27, %v913_v26  ;;  %v978_v38 = vmax.f32 %v922_v31, 0.0 }
 0x274   : > { %v1643_v28 = vpop.f32.mrf.mxu0 }
 0x275   : > { %v925_v30 = vadd.f32 %v1643_v28, %v1469_v27  ;;  %v976_v36 = vmax.f32 %v914_v29, 0.0 }
 0x276   : > { %v916_v32 = vpop.f32.mrf.mxu0 }
 0x277   : > { %v917_v33 = vadd.f32 %v1469_v27, %v916_v32  ;;  %v979_v34 = vmax.f32 %v925_v30, 0.0 }
 0x278   : > { %v1646_v35 = vpop.f32.mrf.mxu0 }
 0x279   : > { %v977_v37 = vmax.f32 %v917_v33, 0.0  ;;  %v993_v41 = vpack.c.bf16 %v979_v34, %v978_v38  ;;  %v938_v45 = vadd.f32 %v1646_v35, %v1469_v27 }
 0x27a   : > { %v929_v39 = vpop.f32.mrf.mxu0 }
 0x27b   : > { %v992_v40 = vpack.c.bf16 %v977_v37, %v976_v36  ;;  %v930_v43 = vadd.f32 %v1469_v27, %v929_v39  ;;  %v982_v52 = vmax.f32 %v938_v45, 0.0 }
 0x27c   : > { %v1647_v42 = vpop.f32.mrf.mxu0 }
 0x27d   : > { %v941_v44 = vadd.f32 %v1647_v42, %v1469_v27  ;;  %1672 = vmatprep.mubr.bf16.mxu1 %v992_v40  ;;  %v980_v50 = vmax.f32 %v930_v43, 0.0 }
 0x27e   : > { %v932_v46 = vpop.f32.mrf.mxu0  ;;  %1673 = vmatmul.mubr.bf16.vlgmr.msra.gmra.mxu1 %v993_v41 }
 0x27f   : > { %v933_v47 = vadd.f32 %v1469_v27, %v932_v46  ;;  %v983_v48 = vmax.f32 %v941_v44, 0.0 }
 0x280   : > { %v1650_v49 = vpop.f32.mrf.mxu0 }
 0x281   : > { %v981_v51 = vmax.f32 %v933_v47, 0.0  ;;  %v995_v55 = vpack.c.bf16 %v983_v48, %v982_v52  ;;  %v954_v59 = vadd.f32 %v1650_v49, %v1469_v27 }
 0x282   : > { %v945_v53 = vpop.f32.mrf.mxu0 }
 0x283   : > { %v994_v54 = vpack.c.bf16 %v981_v51, %v980_v50  ;;  %v946_v57 = vadd.f32 %v1469_v27, %v945_v53  ;;  %v986_v2 = vmax.f32 %v954_v59, 0.0 }
 0x284   : > { %v1651_v56 = vpop.f32.mrf.mxu0 }
 0x285   : > { %v957_v58 = vadd.f32 %v1651_v56, %v1469_v27  ;;  %1676 = vmatprep.mubr.bf16.mxu1 %v994_v54  ;;  %v984_v0 = vmax.f32 %v946_v57, 0.0 }
 0x286   : > { %v948_v60 = vpop.f32.mrf.mxu0  ;;  %1677 = vmatmul.mubr.bf16.gmra.mxu1 %v995_v55 }
 0x287   : > { %v949_v61 = vadd.f32 %v1469_v27, %v948_v60  ;;  %v987_v62 = vmax.f32 %v957_v58, 0.0 }
 0x288   : > { %v1654_v63 = vpop.f32.mrf.mxu0 }
 0x289   : > { %v985_v1 = vmax.f32 %v949_v61, 0.0  ;;  %v997_v5 = vpack.c.bf16 %v987_v62, %v986_v2  ;;  %v970_v9 = vadd.f32 %v1654_v63, %v1469_v27 }
 0x28a   : > { %v961_v3 = vpop.f32.mrf.mxu0 }
 0x28b   : > { %v996_v4 = vpack.c.bf16 %v985_v1, %v984_v0  ;;  %v962_v7 = vadd.f32 %v1469_v27, %v961_v3  ;;  %v990_v15 = vmax.f32 %v970_v9, 0.0 }
 0x28c   : > { %v1655_v6 = vpop.f32.mrf.mxu0 }
 0x28d   : > { %v973_v8 = vadd.f32 %v1655_v6, %v1469_v27  ;;  %1680 = vmatprep.mubr.bf16.mxu1 %v996_v4  ;;  %v988_v13 = vmax.f32 %v962_v7, 0.0 }
 0x28e   : > { %v964_v10 = vpop.f32.mrf.mxu0  ;;  %1681 = vmatmul.mubr.bf16.gmra.mxu1 %v997_v5 }
 0x28f   : > { %v965_v11 = vadd.f32 %v1469_v27, %v964_v10  ;;  %v991_v12 = vmax.f32 %v973_v8, 0.0 }
 0x291   : > { %v989_v14 = vmax.f32 %v965_v11, 0.0  ;;  %v999_v17 = vpack.c.bf16 %v991_v12, %v990_v15 }
 0x293   : > { %v998_v16 = vpack.c.bf16 %v989_v14, %v988_v13  ;;  %v1487_v14 = vld [vmem:[%s2012_s10] ss:$0 sm:$0xff] }
 0x295   : > { %1684 = vmatprep.mubr.bf16.mxu1 %v998_v16 }
 0x296   : > { %1685 = vmatmul.mubr.bf16.gmra.mxu1 %v999_v17 }
 0x33e   : > { %v1674_v21 = vpop.f32.mrf.mxu1 }
 0x33f   : > { %v1114_v27 = vadd.f32 %v1674_v21, %v1478_v23 }
 0x340   : > { %v1105_v22 = vpop.f32.mrf.mxu1 }
 0x341   : > { %v1106_v25 = vadd.f32 %v1478_v23, %v1105_v22  ;;  %v1170_v34 = vmax.f32 %v1114_v27, 0.0 }
 0x342   : > { %v1675_v24 = vpop.f32.mrf.mxu1 }
 0x343   : > { %v1117_v26 = vadd.f32 %v1675_v24, %v1478_v23  ;;  %v1168_v32 = vmax.f32 %v1106_v25, 0.0 }
 0x344   : > { %v1108_v28 = vpop.f32.mrf.mxu1 }
 0x345   : > { %v1109_v29 = vadd.f32 %v1478_v23, %v1108_v28  ;;  %v1171_v30 = vmax.f32 %v1117_v26, 0.0 }
 0x346   : > { %v1678_v31 = vpop.f32.mrf.mxu1 }
 0x347   : > { %v1169_v33 = vmax.f32 %v1109_v29, 0.0  ;;  %v1185_v37 = vpack.c.bf16 %v1171_v30, %v1170_v34  ;;  %v1130_v41 = vadd.f32 %v1678_v31, %v1478_v23 }
 0x348   : > { %v1121_v35 = vpop.f32.mrf.mxu1 }
 0x349   : > { %v1184_v36 = vpack.c.bf16 %v1169_v33, %v1168_v32  ;;  %v1122_v39 = vadd.f32 %v1478_v23, %v1121_v35  ;;  %v1174_v48 = vmax.f32 %v1130_v41, 0.0 }
 0x34a   : > { %v1679_v38 = vpop.f32.mrf.mxu1 }
 0x34b   : > { %v1133_v40 = vadd.f32 %v1679_v38, %v1478_v23  ;;  %1704 = vmatprep.mubr.bf16.mxu0 %v1184_v36  ;;  %v1172_v46 = vmax.f32 %v1122_v39, 0.0 }
 0x34c   : > { %v1124_v42 = vpop.f32.mrf.mxu1  ;;  %1705 = vmatmul.mubr.bf16.vlgmr.msra.gmra.mxu0 %v1185_v37 }
 0x34d   : > { %v1125_v43 = vadd.f32 %v1478_v23, %v1124_v42  ;;  %v1175_v44 = vmax.f32 %v1133_v40, 0.0 }
 0x34e   : > { %v1682_v45 = vpop.f32.mrf.mxu1 }
 0x34f   : > { %v1173_v47 = vmax.f32 %v1125_v43, 0.0  ;;  %v1187_v51 = vpack.c.bf16 %v1175_v44, %v1174_v48  ;;  %v1146_v55 = vadd.f32 %v1682_v45, %v1478_v23 }
 0x350   : > { %v1137_v49 = vpop.f32.mrf.mxu1 }
 0x351   : > { %v1186_v50 = vpack.c.bf16 %v1173_v47, %v1172_v46  ;;  %v1138_v53 = vadd.f32 %v1478_v23, %v1137_v49  ;;  %v1178_v62 = vmax.f32 %v1146_v55, 0.0 }
 0x352   : > { %v1683_v52 = vpop.f32.mrf.mxu1 }
 0x353   : > { %v1149_v54 = vadd.f32 %v1683_v52, %v1478_v23  ;;  %1708 = vmatprep.mubr.bf16.mxu0 %v1186_v50  ;;  %v1176_v60 = vmax.f32 %v1138_v53, 0.0 }
 0x354   : > { %v1140_v56 = vpop.f32.mrf.mxu1  ;;  %1709 = vmatmul.mubr.bf16.gmra.mxu0 %v1187_v51 }
 0x355   : > { %v1141_v57 = vadd.f32 %v1478_v23, %v1140_v56  ;;  %v1179_v58 = vmax.f32 %v1149_v54, 0.0 }
 0x356   : > { %v1686_v59 = vpop.f32.mrf.mxu1 }
 0x357   : > { %v1177_v61 = vmax.f32 %v1141_v57, 0.0  ;;  %v1189_v1 = vpack.c.bf16 %v1179_v58, %v1178_v62  ;;  %v1162_v5 = vadd.f32 %v1686_v59, %v1478_v23 }
 0x358   : > { %v1153_v63 = vpop.f32.mrf.mxu1 }
 0x359   : > { %v1188_v0 = vpack.c.bf16 %v1177_v61, %v1176_v60  ;;  %v1154_v3 = vadd.f32 %v1478_v23, %v1153_v63  ;;  %v1182_v11 = vmax.f32 %v1162_v5, 0.0 }
 0x35a   : > { %v1687_v2 = vpop.f32.mrf.mxu1 }
 0x35b   : > { %v1165_v4 = vadd.f32 %v1687_v2, %v1478_v23  ;;  %1712 = vmatprep.mubr.bf16.mxu0 %v1188_v0  ;;  %v1180_v9 = vmax.f32 %v1154_v3, 0.0 }
 0x35c   : > { %v1156_v6 = vpop.f32.mrf.mxu1  ;;  %1713 = vmatmul.mubr.bf16.gmra.mxu0 %v1189_v1 }
 0x35d   : > { %v1157_v7 = vadd.f32 %v1478_v23, %v1156_v6  ;;  %v1183_v8 = vmax.f32 %v1165_v4, 0.0 }
 0x35f   : > { %v1181_v10 = vmax.f32 %v1157_v7, 0.0  ;;  %v1191_v13 = vpack.c.bf16 %v1183_v8, %v1182_v11 }
 0x361   : > { %v1190_v12 = vpack.c.bf16 %v1181_v10, %v1180_v9 }
 0x363   : > { %1716 = vmatprep.mubr.bf16.mxu0 %v1190_v12 }
 0x364   : > { %1717 = vmatmul.mubr.bf16.gmra.mxu0 %v1191_v13 }
 0x40c   : > { %v1706_v15 = vpop.f32.mrf.mxu0 }
 0x40d   : > { %v1306_v16 = vadd.f32 %v1706_v15, %v1487_v14 }
 0x40e   : > { %v1297_v17 = vpop.f32.mrf.mxu0 }
 0x40f   : > { %1362 = vst [vmem:[%s1981_s19 + $0x10] sm:$0xff] %v1306_v16  ;;  %v1298_v18 = vadd.f32 %v1487_v14, %v1297_v17 }
 0x410   : > { %v1707_v19 = vpop.f32.mrf.mxu0 }
 0x411   : > { %1360 = vst [vmem:[%s1981_s19] sm:$0xff] %v1298_v18  ;;  %v1309_v20 = vadd.f32 %v1707_v19, %v1487_v14 }
 0x412   : > { %v1300_v21 = vpop.f32.mrf.mxu0 }
 0x413   : > { %1363 = vst [vmem:[%s1981_s19 + $0x18] sm:$0xff] %v1309_v20  ;;  %v1301_v22 = vadd.f32 %v1487_v14, %v1300_v21 }
 0x414   : > { %v1710_v23 = vpop.f32.mrf.mxu0 }
 0x415   : > { %1361 = vst [vmem:[%s1981_s19 + $0x8] sm:$0xff] %v1301_v22  ;;  %v1322_v24 = vadd.f32 %v1710_v23, %v1487_v14 }
 0x416   : > { %v1313_v25 = vpop.f32.mrf.mxu0 }
 0x417   : > { %1366 = vst [vmem:[%s1981_s19 + $0x30] sm:$0xff] %v1322_v24  ;;  %v1314_v26 = vadd.f32 %v1487_v14, %v1313_v25 }
 0x418   : > { %v1711_v27 = vpop.f32.mrf.mxu0 }
 0x419   : > { %1364 = vst [vmem:[%s1981_s19 + $0x20] sm:$0xff] %v1314_v26  ;;  %v1325_v28 = vadd.f32 %v1711_v27, %v1487_v14 }
 0x41a   : > { %v1316_v29 = vpop.f32.mrf.mxu0 }
 0x41b   : > { %1367 = vst [vmem:[%s1981_s19 + $0x38] sm:$0xff] %v1325_v28  ;;  %v1317_v30 = vadd.f32 %v1487_v14, %v1316_v29 }
 0x41c   : > { %v1714_v31 = vpop.f32.mrf.mxu0 }
 0x41d   : > { %1365 = vst [vmem:[%s1981_s19 + $0x28] sm:$0xff] %v1317_v30  ;;  %v1338_v32 = vadd.f32 %v1714_v31, %v1487_v14 }
 0x41e   : > { %v1329_v33 = vpop.f32.mrf.mxu0 }
 0x41f   : > { %1370 = vst [vmem:[%s1981_s19 + $0x50] sm:$0xff] %v1338_v32  ;;  %v1330_v34 = vadd.f32 %v1487_v14, %v1329_v33 }
 0x420   : > { %v1715_v35 = vpop.f32.mrf.mxu0 }
 0x421   : > { %1368 = vst [vmem:[%s1981_s19 + $0x40] sm:$0xff] %v1330_v34  ;;  %v1341_v36 = vadd.f32 %v1715_v35, %v1487_v14 }
 0x422   : > { %v1332_v37 = vpop.f32.mrf.mxu0 }
 0x423   : > { %1371 = vst [vmem:[%s1981_s19 + $0x58] sm:$0xff] %v1341_v36  ;;  %v1333_v38 = vadd.f32 %v1487_v14, %v1332_v37 }
 0x424   : > { %v1718_v39 = vpop.f32.mrf.mxu0 }
 0x425   : > { %1369 = vst [vmem:[%s1981_s19 + $0x48] sm:$0xff] %v1333_v38  ;;  %v1354_v40 = vadd.f32 %v1718_v39, %v1487_v14 }
 0x426   : > { %v1345_v41 = vpop.f32.mrf.mxu0 }
 0x427   : > { %1374 = vst [vmem:[%s1981_s19 + $0x70] sm:$0xff] %v1354_v40  ;;  %v1346_v42 = vadd.f32 %v1487_v14, %v1345_v41 }
 0x428   : > { %v1719_v43 = vpop.f32.mrf.mxu0 }
 0x429   : > { %1372 = vst [vmem:[%s1981_s19 + $0x60] sm:$0xff] %v1346_v42  ;;  %v1357_v44 = vadd.f32 %v1719_v43, %v1487_v14 }
 0x42a   : > { %v1348_v45 = vpop.f32.mrf.mxu0 }
 0x42b   : > { %1375 = vst [vmem:[%s1981_s19 + $0x78] sm:$0xff] %v1357_v44  ;;  %v1349_v46 = vadd.f32 %v1487_v14, %v1348_v45 }
 0x42d   : > { %1373 = vst [vmem:[%s1981_s19 + $0x68] sm:$0xff] %v1349_v46 }
 0x42e PF: > { %s21_s17 = sadd.s32 1, %s1776_s17  }
 0x42f   : > { %p18_p4 = scmp.ge.s32.totalorder %s21_s17, 4  }
 0x431   :  { %20 = sbr.rel (!%p18_p4) target bundleno = 1 (0x1), region = 94 }

</bundles_post_ra>
